<compile_context>
chip_gen: v7x
topology: tpu7x:2x2x1
jax: 0.10.0
libtpu: 0.0.40
codegen_flags: <defaults>
</compile_context>

<pallas_src>
import functools
import math

import jax
import jax.numpy as jnp
from jax.experimental import pallas as pl
from jax.experimental.pallas import tpu as pltpu

_INV_SQRT2 = 1.0 / math.sqrt(2.0)
_SQRT_2_OVER_PI = math.sqrt(2.0 / math.pi)
_GELU_C = 0.044715


def _make_kernel(use_tanh: bool):
    def kernel(scale_ref, x_ref, o_ref):
        # scale_ref: scalar-prefetch (SMEM) array (1,) holding n * slope
        # x_ref / o_ref: VMEM tiles of the lane-dense (rows, W) slab
        y = scale_ref[0] * x_ref[...].astype(jnp.float32)
        if use_tanh:
            # tanh-approximate GELU: tanh goes to the EUP slot (separate VLIW
            # slot) -> memory-bound again on v7x / sub-32-bit inputs.
            g = 0.5 * y * (1.0 + jnp.tanh(_SQRT_2_OVER_PI * (y + _GELU_C * y * y * y)))
        else:
            # exact GELU (torch.nn.functional.gelu default): VALU polynomial.
            g = 0.5 * y * (1.0 + jax.lax.erf(y * _INV_SQRT2))
        o_ref[...] = g.astype(o_ref.dtype)

    return kernel


def _ceil_to(a, m):
    return ((a + m - 1) // m) * m


@functools.lru_cache(maxsize=1)
def _is_v7_device() -> bool:
    try:
        return "v7" in jax.devices()[0].device_kind.lower()
    except Exception:  # pragma: no cover - defensive
        return False


def learned_tanh(
    x,
    slope,
    n,
    *,
    approximate=None,
    target_tile_bytes=4 * 1024 * 1024,
    vmem_limit_bytes=None,
    min_pallas_elements=64 * 1024,
    force_pallas=False,
    input_buffer_count=None,
):
    """Applies gelu(n * slope * x) elementwise.

    approximate=None -> auto: tanh-GELU on v7x or for <32-bit inputs (where
    the erf VALU polynomial is the binding unit), exact erf GELU otherwise
    (bit-parity with torch's default).  Pass approximate=False to force exact.
    """
    orig_shape = x.shape
    dtype = x.dtype
    total = int(x.size)
    itemsize = jnp.dtype(dtype).itemsize

    # n * slope fused once in f32 on the host side.
    scale = (jnp.asarray(n, jnp.float32) * jnp.asarray(slope, jnp.float32)).reshape(1)

    if approximate is None:
        approximate = _is_v7_device() or itemsize < 4
    use_tanh = bool(approximate)

    if total == 0:
        return x

    if (not force_pallas) and total < min_pallas_elements:
        # Tiny activations: a single fused XLA pass beats kernel-launch +
        # reshape overhead.
        y = scale[0] * x.astype(jnp.float32)
        return jax.nn.gelu(y, approximate=use_tanh).astype(dtype)

    sub = {4: 8, 2: 16, 1: 32}.get(itemsize, 8)  # sublane tiling per dtype width

    # ---- Build a lane-dense 2-D slab (rows, W) without extra HBM passes ----
    last = orig_shape[-1] if len(orig_shape) >= 1 else total
    pad = 0
    if (
        len(orig_shape) >= 2
        and last % 128 == 0
        and sub * last * itemsize <= target_tile_bytes
    ):
        # Layout-preserving: only leading dims are collapsed (no relayout).
        W = last
        x2d = x.reshape(-1, W)
    else:
        W = 512
        while W > 128 and (total < W or total % W != 0):
            W //= 2
        if total % W == 0 and total >= W:
            x2d = x.reshape(-1, W)  # no pad, no output slice
        else:
            # Awkward element count: pad with zeros (gelu(0) == 0), slice back.
            padded_total = _ceil_to(total, W)
            pad = padded_total - total
            x2d = jnp.pad(x.reshape(-1), (0, pad)).reshape(-1, W)

    rows = x2d.shape[0]

    # ---- Block rows: multiple of the sublane tile, ~target_tile_bytes, and
    # >= 2 grid steps when possible so both v7x TensorCores get work. ----
    if rows <= sub:
        br = rows  # full second-to-last dim is always a legal block dim
    else:
        max_rows = max(sub, (target_tile_bytes // (W * itemsize)) // sub * sub)
        br = min(max_rows, (rows // sub) * sub)
        half = _ceil_to((rows + 1) // 2, sub)
        br = max(sub, min(br, half))
    grid = (pl.cdiv(rows, br),)  # Pallas masks the boundary block's store

    tile_bytes = br * W * itemsize
    n_in_bufs = input_buffer_count if input_buffer_count else 2
    if vmem_limit_bytes is None:
        # in buffers + double-buffered output + slack; keep well under the
        # v7x 32 MiB scoped / 64 MiB physical VMEM budget.
        vmem_limit_bytes = min(
            max((n_in_bufs + 2) * tile_bytes + (2 << 20), 8 << 20), 64 << 20
        )

    in_kwargs = {}
    if input_buffer_count:
        in_kwargs["pipeline_mode"] = pl.Buffered(int(input_buffer_count))

    cost = pl.CostEstimate(
        flops=(10 if use_tanh else 25) * total,
        transcendentals=(total if use_tanh else 0),
        bytes_accessed=2 * total * itemsize,
    )

    out = pl.pallas_call(
        _make_kernel(use_tanh),
        out_shape=jax.ShapeDtypeStruct((rows, W), dtype),
        grid_spec=pltpu.PrefetchScalarGridSpec(
            num_scalar_prefetch=1,  # `scale` lands in SMEM, passed first to kernel
            grid=grid,
            in_specs=[pl.BlockSpec((br, W), lambda i, s_ref: (i, 0), **in_kwargs)],
            out_specs=pl.BlockSpec((br, W), lambda i, s_ref: (i, 0)),
        ),
        compiler_params=pltpu.CompilerParams(
            dimension_semantics=("parallel",),
            vmem_limit_bytes=int(vmem_limit_bytes),
        ),
        cost_estimate=cost,
    )(scale, x2d)

    if pad:
        return out.reshape(-1)[:total].reshape(orig_shape)
    return out.reshape(orig_shape)


if __name__ == "__main__":
    key = jax.random.PRNGKey(0)
    k1, k2, k3, k4 = jax.random.split(key, 4)

    # Deterministic parameters matching LearnedTanh(slope=1), n=1.
    slope = jnp.full((1,), 1.0, dtype=jnp.float32)
    n = jnp.full((1,), 1.0, dtype=jnp.float32)

    # 1) Small NCHW-like input, exact erf GELU, forced through the Pallas kernel.
    x = jax.random.normal(k1, (2, 4, 16, 16), dtype=jnp.float32)
    out = jax.block_until_ready(
        learned_tanh(x, slope, n, approximate=False, force_pallas=True)
    )
    ref = jax.nn.gelu(n * slope * x, approximate=False)
    assert out.shape == x.shape
    assert jnp.allclose(out, ref, atol=1e-5, rtol=1e-5)

    # 2) Layout-preserving fast path (last dim % 128 == 0), >= 2 grid steps.
    x2 = jax.random.normal(k2, (2, 8, 128), dtype=jnp.float32)
    out2 = jax.block_until_ready(
        learned_tanh(x2, slope, n, approximate=False, force_pallas=True)
    )
    ref2 = jax.nn.gelu(n * slope * x2, approximate=False)
    assert jnp.allclose(out2, ref2, atol=1e-5, rtol=1e-5)

    # 3) Awkward element count -> pad (gelu(0)==0) + slice fallback path.
    x3 = jax.random.normal(k3, (3, 5, 17, 13), dtype=jnp.float32)
    out3 = jax.block_until_ready(
        learned_tanh(x3, slope, n, approximate=False, force_pallas=True)
    )
    ref3 = jax.nn.gelu(n * slope * x3, approximate=False)
    assert out3.shape == x3.shape
    assert jnp.allclose(out3, ref3, atol=1e-5, rtol=1e-5)

    # 4) bf16 input -> tanh-approximate GELU path (explicit, documented choice).
    x4 = jax.random.normal(k4, (4, 8, 128), dtype=jnp.bfloat16)
    out4 = jax.block_until_ready(
        learned_tanh(x4, slope, n, approximate=True, force_pallas=True)
    )
    ref4 = jax.nn.gelu((n * slope * x4).astype(jnp.float32), approximate=True).astype(
        jnp.bfloat16
    )
    assert jnp.allclose(
        out4.astype(jnp.float32), ref4.astype(jnp.float32), atol=2e-2, rtol=2e-2
    )

    # 5) Tiny-input XLA fast path (no Pallas launch).
    out5 = jax.block_until_ready(learned_tanh(x, slope, n, approximate=False))
    assert jnp.allclose(out5, ref, atol=1e-5, rtol=1e-5)

    print("KERNEL_OK")
</pallas_src>

<mosaic_0001>
module attributes {stable_mosaic.version = 11 : i64} {
  func.func @kernel(%arg0: i32, %arg1: memref<1xf32, #tpu.memory_space<smem>>, %arg2: memref<4x512xf32, #tpu.memory_space<vmem>>, %arg3: memref<4x512xf32, #tpu.memory_space<vmem>>) attributes {dimension_semantics = [#tpu.dimension_semantics<parallel>], iteration_bounds = array<i64: 1>, scalar_prefetch = 1 : i64, scratch_operands = 0 : i64, tpu.core_type = #tpu.core_type<tc>, window_params = [{transform_indices = @transform_0, window_bounds = array<i64: 4, 512>}, {transform_indices = @transform_1, window_bounds = array<i64: 4, 512>}]} {
    %c0 = arith.constant 0 : index
    %0 = memref.load %arg1[%c0] : memref<1xf32, #tpu.memory_space<smem>>
    %c0_0 = arith.constant 0 : index
    %c0_1 = arith.constant 0 : index
    %1 = vector.load %arg2[%c0_0, %c0_1] : memref<4x512xf32, #tpu.memory_space<vmem>>, vector<4x512xf32>
    %2 = vector.broadcast %0 : f32 to vector<4x512xf32>
    %3 = arith.mulf %2, %1 : vector<4x512xf32>
    %cst = arith.constant 5.000000e-01 : f32
    %4 = vector.broadcast %cst : f32 to vector<4x512xf32>
    %5 = arith.mulf %4, %3 : vector<4x512xf32>
    %cst_2 = arith.constant 0.707106769 : f32
    %6 = vector.broadcast %cst_2 : f32 to vector<4x512xf32>
    %7 = arith.mulf %3, %6 : vector<4x512xf32>
    %8 = math.erf %7 : vector<4x512xf32>
    %cst_3 = arith.constant 1.000000e+00 : f32
    %9 = vector.broadcast %cst_3 : f32 to vector<4x512xf32>
    %10 = arith.addf %9, %8 : vector<4x512xf32>
    %11 = arith.mulf %5, %10 : vector<4x512xf32>
    %c0_4 = arith.constant 0 : index
    %c0_5 = arith.constant 0 : index
    %12 = vector.load %arg3[%c0_4, %c0_5] : memref<4x512xf32, #tpu.memory_space<vmem>>, vector<4x512xf32>
    tpu.vector_store %arg3[%c0_4, %c0_5], %11 {strides = array<i32>} : memref<4x512xf32, #tpu.memory_space<vmem>>, vector<4x512xf32>,
    return
  }
  func.func @transform_0(%arg0: i32, %arg1: memref<1xf32, #tpu.memory_space<smem>>) -> (i32, i32) {
    %c0_i32 = arith.constant 0 : i32
    %c0_i32_0 = arith.constant 0 : i32
    return %arg0, %c0_i32 : i32, i32
  }
  func.func @transform_1(%arg0: i32, %arg1: memref<1xf32, #tpu.memory_space<smem>>) -> (i32, i32) {
    %c0_i32 = arith.constant 0 : i32
    %c0_i32_0 = arith.constant 0 : i32
    return %arg0, %c0_i32 : i32, i32
  }
}

</mosaic_0001>

<bundles_post_ra>
// kernel: tpu_custom_call.1
= control target key start
LH: loop header
LB: loop body
LE: loop exit
PB: predicated region body
PF: predicated region fallthrough
CT: control target
= control target key end

     0   :  { %8 = vsyncpa [#allocation5], 0  ;;  %s154_s0 = inlined_call_operand.<no memory space> [shape: f32[1], index: 0, kind: input, shape index: {}]   ;;  %s155_s1 = inlined_call_operand.hbm [shape: f32[4,512], index: 1, kind: input, shape index: {}]   ;;  %s156_s2 = inlined_call_operand.hbm [shape: f32[4,512], index: 2, kind: output, shape index: {}]  }
   0x1   :  { %9 = vsyncpa [#allocation6], 0  ;;  %s110_s9 = smov [#allocation4]   ;;  %s62_s13 = scalar_lea.hbm %s155_s1, 256 }
   0x2   :  { %s16_s10 = sshll.u32 %s110_s9, 4  ;;  %p63_p0 = scmp.ne.s32.totalorder %s155_s1, %s62_s13  ;;  %s17_s10 = int_to_ptr.vmem [resolvable:$true] %s16_s10 }
   0x3   :  { %p66_p1 = scmp.lt.u32.totalorder %s62_s13, %s155_s1 }
   0x5   :  { %p68_p2 = pnand %p66_p1, %p63_p0 }
   0x7   :  { %71 = shalt.err (!%p68_p2)
}
   0x8   :  { %s72_s18 = scalar_lea.vmem %s17_s10, 256  ;;  %p77_p4 = scmp.lt.s32.totalorder %s17_s10, %s17_s10 }
   0x9   :  { %p73_p3 = scmp.ne.s32.totalorder %s17_s10, %s72_s18  ;;  %p78_p5 = scmp.lt.s32.totalorder %s72_s18, %s72_s18 }
   0xb   :  { %p79_p6 = por %p78_p5, %p77_p4 }
   0xd   :  { %p80_p7 = pnand %p79_p6, %p73_p3 }
   0xf   :  { %83 = shalt.err (!%p80_p7)
}
  0x10   :  { %19 = dma.hbm_to_vmem [thread:$0]  %s155_s1, 256, %s17_s10, [#allocation5]  }
  0x11   :  { %106 = dma.done.wait [#allocation5], 256  }
  0x12   :  { %107 = vsyncadd [#allocation5], 4294967040  ;;  %v26_v0 = vstv %s154_s0  ;;  %v24_v1 = vld [vmem:[#allocation4] sm:$0xff]  ;;  %v25_v2 = vld [vmem:[#allocation4 + $0x8] sm:$0xff]  ;;  %s111_s1 = smov [#allocation7]  }
  0x13   :  { %v27_v3 = vmul.f32 %v26_v0, %v24_v1  ;;  %v28_v4 = vmul.f32 %v26_v0, %v25_v2  ;;  %s47_s23 = sshll.u32 %s111_s1, 4  ;;  %s48_s23 = int_to_ptr.vmem [resolvable:$true] %s47_s23 }
  0x14   :  { %s84_s0 = scalar_lea.vmem %s48_s23, 256  ;;  %p89_p9 = scmp.lt.s32.totalorder %s48_s23, %s48_s23 }
  0x15   :  { %v31_v5 = vmul.f32 0.70710677, %v27_v3  ;;  %v32_v6 = vmul.f32 0.70710677, %v28_v4  ;;  %v29_v7 = vmul.f32 0.5, %v27_v3  ;;  %v30_v9 = vmul.f32 0.5, %v28_v4  ;;  %p85_p8 = scmp.ne.s32.totalorder %s48_s23, %s84_s0  ;;  %p90_p10 = scmp.lt.s32.totalorder %s84_s0, %s84_s0 }
  0x17   :  { %58 = verf.f32 %v31_v5  ;;  %p91_p11 = por %p90_p10, %p89_p9 }
  0x18   :  { %60 = verf.f32 %v32_v6 }
  0x19   :  { %p92_p12 = pnand %p91_p11, %p85_p8 }
  0x21   :  { %v59_v8 = vpop.eup %58 }
  0x22   :  { %v61_v10 = vpop.eup %60  ;;  %v35_v11 = vadd.f32 1.0, %v59_v8 }
  0x23   :  { %v36_v12 = vadd.f32 1.0, %v61_v10 }
  0x24   :  { %v37_v13 = vmul.f32 %v35_v11, %v29_v7 }
  0x25   :  { %v38_v14 = vmul.f32 %v36_v12, %v30_v9 }
  0x26   :  { %39 = vst [vmem:[#allocation7] sm:$0xff] %v37_v13 }
  0x27   :  { %40 = vst [vmem:[#allocation7 + $0x8] sm:$0xff] %v38_v14 }
  0x28   :  { %95 = shalt.err (!%p92_p12)
}
  0x29   :  { %s96_s26 = scalar_lea.hbm %s156_s2, 256 }
  0x2a   :  { %p97_p13 = scmp.ne.s32.totalorder %s156_s2, %s96_s26  ;;  %p100_p0 = scmp.lt.u32.totalorder %s96_s26, %s156_s2 }
  0x2c   :  { %p102_p1 = pnand %p100_p0, %p97_p13 }
  0x2e   :  { %105 = shalt.err (!%p102_p1)
}
  0x2f   :  { %50 = dma.vmem_to_hbm [thread:$0]  %s48_s23, 256, %s156_s2, [#allocation6]  }
  0x30   :  { %108 = dma.done.wait [#allocation6], 256  }
  0x31   :  { %109 = vsyncadd [#allocation6], 4294967040 }
  0x32   :  { %54 = vsyncpa [#allocation5], 1 }
  0x33   :  { %55 = vsyncpa [#allocation6], 1 }

</bundles_post_ra>
